<compile_context>
chip_gen: v5e
topology: v5e:2x2
jax: 0.10.0
libtpu: 0.0.40
codegen_flags: <defaults>
</compile_context>

<pallas_src>
import jax
import jax.numpy as jnp
import numpy as np
from jax.experimental import pallas as pl
from jax.experimental.pallas import tpu as pltpu


def _round_up(x, m):
    return ((x + m - 1) // m) * m


def _balanced_tile(dim, max_tile, align):
    """Pick (tile, padded_dim): fewest aligned tiles covering dim, minimal padding.

    max_tile must be a multiple of align, so the returned tile is always
    align-aligned and <= max_tile.
    """
    dim_al = _round_up(dim, align)
    if dim_al <= max_tile:
        return dim_al, dim_al
    n_tiles = -(-dim_al // max_tile)                      # ceil div
    tile = _round_up(-(-dim_al // n_tiles), align)        # ceil div, align up
    return tile, tile * n_tiles


# ---------------------------------------------------------------------------
# Path 1: whole problem fits in one VMEM block -> no grid machinery at all.
# ---------------------------------------------------------------------------
def _logreg_small_kernel(x_ref, w_ref, b_ref, out_ref):
    acc = jnp.dot(x_ref[...], w_ref[...], preferred_element_type=jnp.float32)
    out_ref[...] = (acc + b_ref[...]).astype(out_ref.dtype)


# ---------------------------------------------------------------------------
# Path 2: 2-D (M, N) grid, K fits in one tile -> no accumulator, no pl.when.
# ---------------------------------------------------------------------------
def _logreg_2d_kernel(x_ref, w_ref, b_ref, out_ref):
    acc = jnp.dot(x_ref[...], w_ref[...], preferred_element_type=jnp.float32)
    out_ref[...] = (acc + b_ref[...]).astype(out_ref.dtype)


# ---------------------------------------------------------------------------
# Path 3: 3-D (M, N, K) grid with f32 VMEM accumulator (bias folded into init).
# ---------------------------------------------------------------------------
def _logreg_tiled_kernel(x_ref, w_ref, b_ref, out_ref, acc_ref):
    k = pl.program_id(2)

    @pl.when(k == 0)
    def _():
        acc_ref[...] = jnp.broadcast_to(b_ref[...], acc_ref.shape).astype(jnp.float32)

    acc_ref[...] += jnp.dot(x_ref[...], w_ref[...],
                            preferred_element_type=jnp.float32)

    @pl.when(k == pl.num_programs(2) - 1)
    def _():
        out_ref[...] = acc_ref[...].astype(out_ref.dtype)


def logreg_forward(seq, weight, bias, *,
                   block_m=512, block_n=512, block_k=1024,
                   use_bf16_mxu=False):
    """y = seq @ weight.T + bias  (PyTorch nn.Linear convention: weight is (C, F))."""
    B, F = seq.shape
    C, F2 = weight.shape
    assert F == F2 and bias.shape == (C,)
    out_dtype = seq.dtype

    # One-time wrapper-side transpose to the canonical (K, N) MXU layout.
    w_t = weight.T  # (F, C)

    # Optional bf16 MXU inputs (accumulation stays f32 inside the kernel).
    in_dtype = jnp.bfloat16 if use_bf16_mxu else seq.dtype
    x = seq.astype(in_dtype)
    w_t = w_t.astype(in_dtype)
    b2 = bias.reshape(1, C).astype(jnp.float32)

    # Balanced, lane/sublane-aligned tiles (batch x8, K/N x128) with minimal padding.
    tm, B_pad = _balanced_tile(B, block_m, 8)
    tn, C_pad = _balanced_tile(C, block_n, 128)
    tk, F_pad = _balanced_tile(F, block_k, 128)

    # Zero padding: extra K columns contribute 0 to the dot; extra rows/cols are
    # sliced off below.  (Zero-width pads are elided by XLA.)
    x_p = jnp.pad(x, ((0, B_pad - B), (0, F_pad - F)))
    w_p = jnp.pad(w_t, ((0, F_pad - F), (0, C_pad - C)))
    b_p = jnp.pad(b2, ((0, 0), (0, C_pad - C)))

    gm, gn, gk = B_pad // tm, C_pad // tn, F_pad // tk
    compiler_params_2d = pltpu.CompilerParams(
        dimension_semantics=("parallel", "parallel"),
        vmem_limit_bytes=32 * 1024 * 1024,
    )

    if (gm, gn, gk) == (1, 1, 1):
        # Tiny case: drop the grid machinery entirely, single VMEM block.
        out_p = pl.pallas_call(
            _logreg_small_kernel,
            out_shape=jax.ShapeDtypeStruct((B_pad, C_pad), out_dtype),
            in_specs=[
                pl.BlockSpec(memory_space=pltpu.MemorySpace.VMEM),
                pl.BlockSpec(memory_space=pltpu.MemorySpace.VMEM),
                pl.BlockSpec(memory_space=pltpu.MemorySpace.VMEM),
            ],
            out_specs=pl.BlockSpec(memory_space=pltpu.MemorySpace.VMEM),
        )(x_p, w_p, b_p)
    elif gk == 1:
        # K fits in one tile: no accumulator scratch, no pl.when.
        out_p = pl.pallas_call(
            _logreg_2d_kernel,
            out_shape=jax.ShapeDtypeStruct((B_pad, C_pad), out_dtype),
            grid_spec=pltpu.PrefetchScalarGridSpec(
                num_scalar_prefetch=0,
                grid=(gm, gn),
                in_specs=[
                    pl.BlockSpec((tm, tk), lambda i, j: (i, 0)),
                    # Weight / bias index_maps are batch-invariant -> not re-fetched
                    # when only the batch tile changes.
                    pl.BlockSpec((tk, tn), lambda i, j: (0, j)),
                    pl.BlockSpec((1, tn), lambda i, j: (0, j)),
                ],
                out_specs=pl.BlockSpec((tm, tn), lambda i, j: (i, j)),
            ),
            compiler_params=compiler_params_2d,
        )(x_p, w_p, b_p)
    else:
        out_p = pl.pallas_call(
            _logreg_tiled_kernel,
            out_shape=jax.ShapeDtypeStruct((B_pad, C_pad), out_dtype),
            grid_spec=pltpu.PrefetchScalarGridSpec(
                num_scalar_prefetch=0,
                grid=(gm, gn, gk),
                in_specs=[
                    pl.BlockSpec((tm, tk), lambda i, j, k: (i, k)),
                    pl.BlockSpec((tk, tn), lambda i, j, k: (k, j)),
                    pl.BlockSpec((1, tn), lambda i, j, k: (0, j)),
                ],
                out_specs=pl.BlockSpec((tm, tn), lambda i, j, k: (i, j)),
                scratch_shapes=[pltpu.VMEM((tm, tn), jnp.float32)],
            ),
            compiler_params=pltpu.CompilerParams(
                dimension_semantics=("parallel", "parallel", "arbitrary"),
                vmem_limit_bytes=32 * 1024 * 1024,  # safe on v5e/v6e/v7x
            ),
        )(x_p, w_p, b_p)

    return out_p[:B, :C]


def xavier_uniform(key, shape, dtype=jnp.float32):
    # Matches torch.nn.init.xavier_uniform_ for a Linear weight (out, in).
    fan_out, fan_in = shape
    limit = float(np.sqrt(6.0 / (fan_in + fan_out)))
    return jax.random.uniform(key, shape, dtype=dtype, minval=-limit, maxval=limit)


if __name__ == "__main__":
    key = jax.random.PRNGKey(0)
    k_seq, k_w, k_seq2, k_w2, k_b2 = jax.random.split(key, 5)

    # --- Test 1: module-sized problem (exercises the single-block fast path) ---
    batch, ft_in, nb_classes = 8, 32, 16
    seq = jax.random.normal(k_seq, (batch, ft_in), dtype=jnp.float32)
    weight = xavier_uniform(k_w, (nb_classes, ft_in))   # nn.Linear weight (C, F)
    bias = jnp.zeros((nb_classes,), dtype=jnp.float32)  # bias.data.fill_(0.0)

    out = jax.block_until_ready(logreg_forward(seq, weight, bias))
    ref = np.asarray(seq, dtype=np.float64) @ np.asarray(weight, dtype=np.float64).T \
        + np.asarray(bias, dtype=np.float64)
    np.testing.assert_allclose(np.asarray(out), ref, rtol=1e-5, atol=1e-5)

    # --- Test 2: larger, unaligned problem (exercises the 3-D accumulator path) ---
    B2, F2, C2 = 768, 2240, 640
    seq2 = jax.random.normal(k_seq2, (B2, F2), dtype=jnp.float32)
    weight2 = xavier_uniform(k_w2, (C2, F2))
    bias2 = jax.random.normal(k_b2, (C2,), dtype=jnp.float32) * 0.1

    out2 = jax.block_until_ready(logreg_forward(seq2, weight2, bias2))
    ref2 = np.asarray(seq2, dtype=np.float64) @ np.asarray(weight2, dtype=np.float64).T \
        + np.asarray(bias2, dtype=np.float64)
    np.testing.assert_allclose(np.asarray(out2), ref2, rtol=1e-3, atol=1e-3)

    # --- Test 3: K fits in one tile but M/N need tiling (exercises the 2-D path) ---
    B3, F3, C3 = 640, 512, 768
    k3a, k3b, k3c = jax.random.split(k_b2, 3)
    seq3 = jax.random.normal(k3a, (B3, F3), dtype=jnp.float32)
    weight3 = xavier_uniform(k3b, (C3, F3))
    bias3 = jax.random.normal(k3c, (C3,), dtype=jnp.float32) * 0.1

    out3 = jax.block_until_ready(logreg_forward(seq3, weight3, bias3))
    ref3 = np.asarray(seq3, dtype=np.float64) @ np.asarray(weight3, dtype=np.float64).T \
        + np.asarray(bias3, dtype=np.float64)
    np.testing.assert_allclose(np.asarray(out3), ref3, rtol=1e-3, atol=1e-3)

    print("KERNEL_OK")
</pallas_src>

<mosaic_0001>
module attributes {stable_mosaic.version = 11 : i64} {
  func.func @_logreg_small_kernel(%arg0: memref<8x128xf32, #tpu.memory_space<vmem>>, %arg1: memref<128x128xf32, #tpu.memory_space<vmem>>, %arg2: memref<1x128xf32, #tpu.memory_space<vmem>>, %arg3: memref<8x128xf32, #tpu.memory_space<vmem>>) attributes {dimension_semantics = [], scalar_prefetch = 0 : i64, scratch_operands = 0 : i64, tpu.core_type = #tpu.core_type<tc>} {
    %c0 = arith.constant 0 : index
    %c0_0 = arith.constant 0 : index
    %0 = vector.load %arg0[%c0, %c0_0] : memref<8x128xf32, #tpu.memory_space<vmem>>, vector<8x128xf32>
    %c0_1 = arith.constant 0 : index
    %c0_2 = arith.constant 0 : index
    %1 = vector.load %arg1[%c0_1, %c0_2] : memref<128x128xf32, #tpu.memory_space<vmem>>, vector<128x128xf32>
    %cst = arith.constant dense<0.000000e+00> : vector<8x128xf32>
    %2 = tpu.matmul %0, %1, %cst {dimension_numbers = #tpu.dot_dimension_numbers<[1], [0], [0], [1], [0, 0, 1, 1], [], []>} : vector<8x128xf32>, vector<128x128xf32>, vector<8x128xf32> -> vector<8x128xf32>
    %c0_3 = arith.constant 0 : index
    %c0_4 = arith.constant 0 : index
    %3 = vector.load %arg2[%c0_3, %c0_4] : memref<1x128xf32, #tpu.memory_space<vmem>>, vector<1x128xf32>
    %4 = vector.broadcast %3 : vector<1x128xf32> to vector<8x128xf32>
    %5 = arith.addf %2, %4 : vector<8x128xf32>
    %c0_5 = arith.constant 0 : index
    %c0_6 = arith.constant 0 : index
    %6 = vector.load %arg3[%c0_5, %c0_6] : memref<8x128xf32, #tpu.memory_space<vmem>>, vector<8x128xf32>
    tpu.vector_store %arg3[%c0_5, %c0_6], %5 {strides = array<i32>} : memref<8x128xf32, #tpu.memory_space<vmem>>, vector<8x128xf32>,
    return
  }
}

</mosaic_0001>

<bundles_post_ra>
// kernel: tpu_custom_call.1
= control target key start
LH: loop header
LB: loop body
LE: loop exit
PB: predicated region body
PF: predicated region fallthrough
CT: control target
= control target key end

     0   :  { %8 = vsyncpa [#allocation3], 0  ;;  %s226_s0 = inlined_call_operand.hbm [shape: f32[8,128], index: 0, kind: input, shape index: {}]   ;;  %s227_s1 = inlined_call_operand.hbm [shape: f32[128,128], index: 1, kind: input, shape index: {}]   ;;  %s228_s2 = inlined_call_operand.vmem [shape: f32[1,128], index: 2, kind: input, shape index: {}]   ;;  %s229_s3 = inlined_call_operand.hbm [shape: f32[8,128], index: 3, kind: output, shape index: {}]  }
   0x1   :  { %9 = vsyncpa [#allocation6], 0 }
   0x2   :  { %10 = vsyncpa [#allocation4], 0  ;;  %s16_s14 = sshll.u32 %s226_s0, 4  ;;  %s189_s15 = smov [#allocation2]   ;;  %s17_s14 = int_to_ptr.hbm [resolvable:$true] %s16_s14 }
   0x3   :  { %s18_s16 = sshll.u32 %s189_s15, 4  ;;  %s26_s19 = sshll.u32 %s227_s1, 4  ;;  %s19_s16 = int_to_ptr.vmem [resolvable:$true] %s18_s16  ;;  %s27_s19 = int_to_ptr.hbm [resolvable:$true] %s26_s19 }
   0x4   :  { %21 = dma.hbm_to_vmem [thread:$0]  %s17_s14, 128, %s19_s16, [#allocation3]  }
   0x5   :  { %s190_s20 = smov [#allocation5]   ;;  %s191_s22 = smov 128  }
   0x6   :  { %s28_s21 = sshll.u32 %s190_s20, 4  ;;  %s192_s23 = smov 8   ;;  %s29_s21 = int_to_ptr.vmem [resolvable:$true] %s28_s21 }
   0x7   :  { %34 = dma.hbm_to_vmem [thread:$0]  %s27_s19, 2048, %s29_s21, [#allocation6], %s191_s22, %s191_s22, %s192_s23  }
   0x8   :  { %183 = dma.done.wait [#allocation3], 128  }
   0x9   :  { %184 = vsyncadd [#allocation3], 4294967168 }
   0xa   :  { %185 = dma.done.wait [#allocation6], 2048  }
   0xb   :  { %186 = vsyncadd [#allocation6], 4294965248  ;;  %v61_v0 = vld [vmem:[#allocation5 + $0x78] sm:$0xff]  ;;  %v60_v1 = vld [vmem:[#allocation5 + $0x70] sm:$0xff]  ;;  %s193_s24 = smov [#allocation7]   ;;  %s94_s28 = sshll.u32 %s229_s3, 4  ;;  %s95_s28 = int_to_ptr.hbm [resolvable:$true] %s94_s28 }
   0xc   :  { %66 = vmatpush.msra.mxu0 %v61_v0  ;;  %v59_v2 = vld [vmem:[#allocation5 + $0x68] sm:$0xff]  ;;  %v58_v3 = vld [vmem:[#allocation5 + $0x60] sm:$0xff]  ;;  %v57_v4 = vld [vmem:[#allocation5 + $0x58] sm:$0xff]  ;;  %s92_s25 = sshll.u32 %s193_s24, 4  ;;  %s93_s25 = int_to_ptr.vmem [resolvable:$true] %s92_s25 }
   0xd   :  { %v56_v5 = vld [vmem:[#allocation5 + $0x50] sm:$0xff]  ;;  %v55_v6 = vld [vmem:[#allocation5 + $0x48] sm:$0xff]  ;;  %v54_v7 = vld [vmem:[#allocation5 + $0x40] sm:$0xff] }
   0xe   :  { %67 = vmatpush.msra.mxu0 %v60_v1  ;;  %v53_v8 = vld [vmem:[#allocation5 + $0x38] sm:$0xff]  ;;  %v52_v9 = vld [vmem:[#allocation5 + $0x30] sm:$0xff]  ;;  %v51_v10 = vld [vmem:[#allocation5 + $0x28] sm:$0xff] }
   0xf   :  { %v50_v11 = vld [vmem:[#allocation5 + $0x20] sm:$0xff]  ;;  %v49_v12 = vld [vmem:[#allocation5 + $0x18] sm:$0xff]  ;;  %v48_v13 = vld [vmem:[#allocation5 + $0x10] sm:$0xff] }
  0x10   :  { %68 = vmatpush.msra.mxu0 %v59_v2  ;;  %v47_v14 = vld [vmem:[#allocation5 + $0x8] sm:$0xff]  ;;  %v46_v15 = vld [vmem:[#allocation5] sm:$0xff]  ;;  %v45_v16 = vld [vmem:[#allocation2] sm:$0xff] }
  0x11   :  { %v110_v17 = vld [vmem:[%s228_s2] ss:$0 sm:$0xff] }
  0x12   :  { %69 = vmatpush.msra.mxu0 %v58_v3 }
  0x14   :  { %70 = vmatpush.msra.mxu0 %v57_v4 }
  0x16   :  { %71 = vmatpush.msra.mxu0 %v56_v5 }
  0x18   :  { %72 = vmatpush.msra.mxu0 %v55_v6 }
  0x1a   :  { %73 = vmatpush.msra.mxu0 %v54_v7 }
  0x1c   :  { %74 = vmatpush.msra.mxu0 %v53_v8 }
  0x1e   :  { %75 = vmatpush.msra.mxu0 %v52_v9 }
  0x20   :  { %76 = vmatpush.msra.mxu0 %v51_v10 }
  0x22   :  { %77 = vmatpush.msra.mxu0 %v50_v11 }
  0x24   :  { %78 = vmatpush.msra.mxu0 %v49_v12 }
  0x26   :  { %79 = vmatpush.msra.mxu0 %v48_v13 }
  0x28   :  { %80 = vmatpush.msra.mxu0 %v47_v14 }
  0x2a   :  { %81 = vmatpush.msra.mxu0 %v46_v15 }
  0x2b   :  { %82 = vmatmul.f32.vlgmr.msra.gmra.mxu0 %v45_v16 }
  0xa8   :  { %v83_v18 = vpop.f32.mrf.mxu0 }
  0xa9   :  { %v84_v19 = vadd.f32 %v110_v17, %v83_v18 }
  0xab   :  { %86 = vst [vmem:[#allocation7] sm:$0xff] %v84_v19 }
  0xac   :  { %97 = dma.vmem_to_hbm [thread:$0]  %s93_s25, 128, %s95_s28, [#allocation4]  }
  0xad   :  { %187 = dma.done.wait [#allocation4], 128  }
  0xae   :  { %188 = vsyncadd [#allocation4], 4294967168 }
  0xaf   :  { %102 = vsyncpa [#allocation3], 1 }
  0xb0   :  { %103 = vsyncpa [#allocation6], 1 }
  0xb1   :  { %104 = vsyncpa [#allocation4], 1 }

</bundles_post_ra>
